<compile_context>
chip_gen: v6e
topology: v6e:2x2x1
jax: 0.10.0
libtpu: 0.0.40
codegen_flags: <defaults>
</compile_context>

<pallas_src>
import functools

import jax
import jax.numpy as jnp
from jax.experimental import pallas as pl
from jax.experimental.pallas import tpu as pltpu


VMEM_BUDGET_BYTES = 32 * 1024 * 1024  # conservative scoped-VMEM target (all gens)


def _round_up(v, m):
    return ((v + m - 1) // m) * m


def _cdiv(a, b):
    return -(-a // b)


def _block_spec(shape, index_map, buffers=None):
    """BlockSpec helper; requests an explicit buffer count when supported."""
    if buffers is not None:
        try:
            return pl.BlockSpec(shape, index_map,
                                pipeline_mode=pl.Buffered(buffers))
        except (TypeError, AttributeError):
            pass  # older jax without pipeline_mode/Buffered -> default buffering
    return pl.BlockSpec(shape, index_map)


def _maxout_kernel(x_ref, w_ref, b_ref, o_ref, acc_ref, *, n_units, output_size):
    k = pl.program_id(1)

    @pl.when(k == 0)
    def _():
        acc_ref[...] = jnp.zeros_like(acc_ref)

    # Fused matmul over all maxout units for this (batch tile, K tile).
    acc_ref[...] += jnp.dot(x_ref[...], w_ref[...],
                            preferred_element_type=jnp.float32)

    @pl.when(k == pl.num_programs(1) - 1)
    def _():
        y = acc_ref[...] + b_ref[...]          # (tb, wide) + (1, wide) broadcast
        # Maxout: max over contiguous per-unit slabs of output_size columns.
        m = y[:, 0:output_size]
        for u in range(1, n_units):
            s = u * output_size
            m = jnp.maximum(m, y[:, s:s + output_size])
        o_ref[...] = m


def pack_maxout_params(weight, bias, n_units, output_size, *, tk=None,
                       vmem_budget=VMEM_BUDGET_BYTES):
    """One-time (model-load) repack of the PyTorch Linear parameters.

    weight: (n_units*output_size, input_size) -> (K_pad, wide) with contiguous
            packing (column u*output_size + o), lane-padded to wide = a
            multiple of 128 and (if K-tiling is needed) K zero-padded to K_pad.
    bias:   (n_units*output_size,) -> (1, wide), zero-padded.
    Returns (w_packed, b_packed, meta).
    """
    n_out, K = weight.shape
    assert n_out == n_units * output_size
    wide = _round_up(n_units * output_size, 128)
    usable = int(vmem_budget * 0.7)

    # Keep the whole (K, wide) weight resident (single-buffered) unless it
    # would eat more than half the usable budget -> then tile K.
    if tk is None:
        if K * wide * 4 <= usable // 2:
            tk = K
        else:
            tk = max(128, ((usable // 2) // (2 * wide * 4)) // 128 * 128)
    if tk >= K:
        tk, nk, K_pad = K, 1, K
    else:
        tk = _round_up(tk, 128)
        nk = _cdiv(K, tk)
        K_pad = nk * tk

    w = jnp.transpose(weight, (1, 0))                       # (K, n_units*output_size)
    w = jnp.pad(w, ((0, K_pad - K), (0, wide - n_units * output_size)))
    b = jnp.pad(bias, (0, wide - n_units * output_size)).reshape(1, wide)

    meta = dict(n_units=n_units, output_size=output_size, wide=wide,
                K=K, K_pad=K_pad, tk=tk, nk=nk, vmem_budget=vmem_budget)
    return w.astype(jnp.float32), b.astype(jnp.float32), meta


def maxout_linear(x, w_packed, b_packed, meta, *, tb=None):
    """x: (B, input_size) f32. Returns (B, output_size) f32."""
    B, K = x.shape
    assert K == meta["K"]
    n_units = meta["n_units"]
    output_size = meta["output_size"]
    wide, K_pad, tk, nk = meta["wide"], meta["K_pad"], meta["tk"], meta["nk"]
    budget = meta["vmem_budget"]
    usable = int(budget * 0.7)

    if K_pad != K:
        x = jnp.pad(x, ((0, 0), (0, K_pad - K)))

    # --- batch tile from the VMEM budget ---
    w_bufs = 1 if nk == 1 else 2                      # single-buffer invariant weight
    fixed = w_bufs * tk * wide * 4 + wide * 4         # weight + bias residents
    per_row = (2 * tk + 2 * output_size + 2 * wide) * 4   # x(dbl) + out(dbl) + acc + y
    tb_cap = max(8, min(1024, ((usable - fixed) // per_row) // 8 * 8))
    if tb is None:
        nb = max(1, _cdiv(B, tb_cap))
        if nb == 1 and B >= 16:
            nb = 2   # let v7x's two TensorCores / megacore both get a tile
        tb = _round_up(_cdiv(B, nb), 8)
    else:
        tb = _round_up(tb, 8)
        nb = _cdiv(B, tb)
    B_pad = nb * tb
    if B_pad != B:
        x = jnp.pad(x, ((0, B_pad - B), (0, 0)))

    kernel = functools.partial(_maxout_kernel, n_units=n_units,
                               output_size=output_size)

    in_specs = [
        pl.BlockSpec((tb, tk), lambda i, k: (i, k)),                # x batch/K tile
        _block_spec((tk, wide), lambda i, k: (k, 0),
                    buffers=1 if nk == 1 else None),                # packed weights
        _block_spec((1, wide), lambda i, k: (0, 0), buffers=1),     # packed bias
    ]

    out = pl.pallas_call(
        kernel,
        out_shape=jax.ShapeDtypeStruct((B_pad, output_size), jnp.float32),
        grid_spec=pltpu.PrefetchScalarGridSpec(
            num_scalar_prefetch=0,
            grid=(nb, nk),
            in_specs=in_specs,
            out_specs=pl.BlockSpec((tb, output_size), lambda i, k: (i, 0)),
            scratch_shapes=[pltpu.VMEM((tb, wide), jnp.float32)],
        ),
        compiler_params=pltpu.CompilerParams(
            dimension_semantics=("parallel", "arbitrary"),
            vmem_limit_bytes=budget,
        ),
        cost_estimate=pl.CostEstimate(
            flops=2 * B_pad * K_pad * wide,
            transcendentals=0,
            bytes_accessed=4 * (B_pad * K_pad + K_pad * wide + wide
                                + B_pad * output_size),
        ),
    )(x, w_packed, b_packed)

    return out[:B]


if __name__ == "__main__":
    # Config 1: small shapes consistent with the module (no K tiling,
    # single-buffered resident weight).
    batch, input_size, output_size, n_units = 8, 32, 16, 4

    key = jax.random.PRNGKey(0)
    kx, kw, kb = jax.random.split(key, 3)
    x = jax.random.normal(kx, (batch, input_size), dtype=jnp.float32)
    bound = 1.0 / jnp.sqrt(jnp.float32(input_size))
    weight = jax.random.uniform(kw, (n_units * output_size, input_size),
                                minval=-bound, maxval=bound, dtype=jnp.float32)
    bias = jax.random.uniform(kb, (n_units * output_size,),
                              minval=-bound, maxval=bound, dtype=jnp.float32)

    w_packed, b_packed, meta = pack_maxout_params(weight, bias, n_units,
                                                  output_size)
    out = jax.block_until_ready(maxout_linear(x, w_packed, b_packed, meta))
    ref = (x @ weight.T + bias).reshape(-1, n_units, output_size).max(axis=1)
    assert out.shape == (batch, output_size)
    assert jnp.allclose(out, ref, atol=1e-5, rtol=1e-5)

    # Config 2: exercises the K-tiled accumulator path (forced tk=128),
    # batch padding, and the 2-way parallel batch split.
    batch2, input2 = 40, 512
    kx2, kw2, kb2 = jax.random.split(jax.random.PRNGKey(1), 3)
    x2 = jax.random.normal(kx2, (batch2, input2), dtype=jnp.float32)
    bound2 = 1.0 / jnp.sqrt(jnp.float32(input2))
    weight2 = jax.random.uniform(kw2, (n_units * output_size, input2),
                                 minval=-bound2, maxval=bound2, dtype=jnp.float32)
    bias2 = jax.random.uniform(kb2, (n_units * output_size,),
                               minval=-bound2, maxval=bound2, dtype=jnp.float32)
    w2, b2, meta2 = pack_maxout_params(weight2, bias2, n_units, output_size,
                                       tk=128)
    out2 = jax.block_until_ready(maxout_linear(x2, w2, b2, meta2))
    ref2 = (x2 @ weight2.T + bias2).reshape(-1, n_units, output_size).max(axis=1)
    assert out2.shape == (batch2, output_size)
    assert jnp.allclose(out2, ref2, atol=1e-3, rtol=1e-3)

    print("KERNEL_OK")
</pallas_src>

<mosaic_0001>
module attributes {stable_mosaic.version = 11 : i64} {
  func.func @_maxout_kernel(%arg0: i32, %arg1: i32, %arg2: memref<8x32xf32, #tpu.memory_space<vmem>>, %arg3: memref<32x128xf32, #tpu.memory_space<vmem>>, %arg4: memref<1x128xf32, #tpu.memory_space<vmem>>, %arg5: memref<8x16xf32, #tpu.memory_space<vmem>>, %arg6: memref<8x128xf32, #tpu.memory_space<vmem>>) attributes {dimension_semantics = [#tpu.dimension_semantics<parallel>, #tpu.dimension_semantics<arbitrary>], iteration_bounds = array<i64: 1, 1>, scalar_prefetch = 0 : i64, scratch_operands = 1 : i64, tpu.core_type = #tpu.core_type<tc>, window_params = [{transform_indices = @transform_0, window_bounds = array<i64: 8, 32>}, {pipeline_mode = #tpu.pipeline_mode<synchronous>, transform_indices = @transform_1, window_bounds = array<i64: 32, 128>}, {pipeline_mode = #tpu.pipeline_mode<synchronous>, transform_indices = @transform_2, window_bounds = array<i64: 1, 128>}, {transform_indices = @transform_3, window_bounds = array<i64: 8, 16>}]} {
    %c0_i32 = arith.constant 0 : i32
    %0 = arith.cmpi eq, %arg1, %c0_i32 : i32
    %1 = arith.extui %0 : i1 to i32
    %c0_i32_0 = arith.constant 0 : i32
    %2 = arith.cmpi ne, %1, %c0_i32_0 : i32
    scf.if %2 {
      %cst_10 = arith.constant 0.000000e+00 : f32
      %12 = vector.broadcast %cst_10 : f32 to vector<8x128xf32>
      %c0_11 = arith.constant 0 : index
      %c0_12 = arith.constant 0 : index
      %13 = vector.load %arg6[%c0_11, %c0_12] : memref<8x128xf32, #tpu.memory_space<vmem>>, vector<8x128xf32>
      tpu.vector_store %arg6[%c0_11, %c0_12], %12 {strides = array<i32>} : memref<8x128xf32, #tpu.memory_space<vmem>>, vector<8x128xf32>,
    } else {
    }
    %c0 = arith.constant 0 : index
    %c0_1 = arith.constant 0 : index
    %3 = vector.load %arg6[%c0, %c0_1] : memref<8x128xf32, #tpu.memory_space<vmem>>, vector<8x128xf32>
    %c0_2 = arith.constant 0 : index
    %c0_3 = arith.constant 0 : index
    %4 = vector.load %arg2[%c0_2, %c0_3] : memref<8x32xf32, #tpu.memory_space<vmem>>, vector<8x32xf32>
    %c0_4 = arith.constant 0 : index
    %c0_5 = arith.constant 0 : index
    %5 = vector.load %arg3[%c0_4, %c0_5] : memref<32x128xf32, #tpu.memory_space<vmem>>, vector<32x128xf32>
    %cst = arith.constant dense<0.000000e+00> : vector<8x128xf32>
    %6 = tpu.matmul %4, %5, %cst {dimension_numbers = #tpu.dot_dimension_numbers<[1], [0], [0], [1], [0, 0, 1, 1], [], []>} : vector<8x32xf32>, vector<32x128xf32>, vector<8x128xf32> -> vector<8x128xf32>
    %7 = arith.addf %3, %6 : vector<8x128xf32>
    %c0_6 = arith.constant 0 : index
    %c0_7 = arith.constant 0 : index
    %8 = vector.load %arg6[%c0_6, %c0_7] : memref<8x128xf32, #tpu.memory_space<vmem>>, vector<8x128xf32>
    tpu.vector_store %arg6[%c0_6, %c0_7], %7 {strides = array<i32>} : memref<8x128xf32, #tpu.memory_space<vmem>>, vector<8x128xf32>,
    %c0_i32_8 = arith.constant 0 : i32
    %9 = arith.cmpi eq, %arg1, %c0_i32_8 : i32
    %10 = arith.extui %9 : i1 to i32
    %c0_i32_9 = arith.constant 0 : i32
    %11 = arith.cmpi ne, %10, %c0_i32_9 : i32
    scf.if %11 {
      %c0_10 = arith.constant 0 : index
      %c0_11 = arith.constant 0 : index
      %12 = vector.load %arg6[%c0_10, %c0_11] : memref<8x128xf32, #tpu.memory_space<vmem>>, vector<8x128xf32>
      %c0_12 = arith.constant 0 : index
      %c0_13 = arith.constant 0 : index
      %13 = vector.load %arg4[%c0_12, %c0_13] : memref<1x128xf32, #tpu.memory_space<vmem>>, vector<1x128xf32>
      %14 = vector.broadcast %13 : vector<1x128xf32> to vector<8x128xf32>
      %15 = arith.addf %12, %14 : vector<8x128xf32>
      %16 = vector.extract_strided_slice %15 {offsets = [0, 0], sizes = [8, 16], strides = [1, 1]} : vector<8x128xf32> to vector<8x16xf32>
      %17 = vector.extract_strided_slice %15 {offsets = [0, 16], sizes = [8, 16], strides = [1, 1]} : vector<8x128xf32> to vector<8x16xf32>
      %18 = arith.maximumf %16, %17 : vector<8x16xf32>
      %19 = vector.extract_strided_slice %15 {offsets = [0, 32], sizes = [8, 16], strides = [1, 1]} : vector<8x128xf32> to vector<8x16xf32>
      %20 = arith.maximumf %18, %19 : vector<8x16xf32>
      %21 = vector.extract_strided_slice %15 {offsets = [0, 48], sizes = [8, 16], strides = [1, 1]} : vector<8x128xf32> to vector<8x16xf32>
      %22 = arith.maximumf %20, %21 : vector<8x16xf32>
      %c0_14 = arith.constant 0 : index
      %c0_15 = arith.constant 0 : index
      %23 = vector.load %arg5[%c0_14, %c0_15] : memref<8x16xf32, #tpu.memory_space<vmem>>, vector<8x16xf32>
      tpu.vector_store %arg5[%c0_14, %c0_15], %22 {strides = array<i32>} : memref<8x16xf32, #tpu.memory_space<vmem>>, vector<8x16xf32>,
    } else {
    }
    return
  }
  func.func @transform_0(%arg0: i32, %arg1: i32) -> (i32, i32) {
    %c0_i32 = arith.constant 0 : i32
    return %arg0, %arg1 : i32, i32
  }
  func.func @transform_1(%arg0: i32, %arg1: i32) -> (i32, i32) {
    %c0_i32 = arith.constant 0 : i32
    %c0_i32_0 = arith.constant 0 : i32
    return %arg1, %c0_i32 : i32, i32
  }
  func.func @transform_2(%arg0: i32, %arg1: i32) -> (i32, i32) {
    %c0_i32 = arith.constant 0 : i32
    %c0_i32_0 = arith.constant 0 : i32
    %c0_i32_1 = arith.constant 0 : i32
    return %c0_i32, %c0_i32_0 : i32, i32
  }
  func.func @transform_3(%arg0: i32, %arg1: i32) -> (i32, i32) {
    %c0_i32 = arith.constant 0 : i32
    %c0_i32_0 = arith.constant 0 : i32
    return %arg0, %c0_i32 : i32, i32
  }
}

</mosaic_0001>

<bundles_post_ra>
// kernel: tpu_custom_call.1
= control target key start
LH: loop header
LB: loop body
LE: loop exit
PB: predicated region body
PF: predicated region fallthrough
CT: control target
= control target key end

     0   :  { %8 = vsyncpa [#allocation4], 0  ;;  %s307_s0 = inlined_call_operand.hbm [shape: f32[8,32], index: 0, kind: input, shape index: {}]   ;;  %s308_s1 = inlined_call_operand.hbm [shape: f32[32,128], index: 1, kind: input, shape index: {}]   ;;  %s309_s2 = inlined_call_operand.vmem [shape: f32[1,128], index: 2, kind: input, shape index: {}]   ;;  %s310_s3 = inlined_call_operand.hbm [shape: f32[8,16], index: 3, kind: output, shape index: {}]  }
   0x1   :  { %9 = vsyncpa [#allocation7], 0 }
   0x2   :  { %10 = vsyncpa [#allocation5], 0  ;;  %s265_s12 = smov [#allocation3]   ;;  %s266_s14 = smov [#allocation6]  }
   0x3   :  { %s17_s13 = sshll.u32 %s265_s12, 4  ;;  %s26_s15 = sshll.u32 %s266_s14, 4  ;;  %s18_s13 = int_to_ptr.vmem [resolvable:$true] %s17_s13  ;;  %s27_s15 = int_to_ptr.vmem [resolvable:$true] %s26_s15 }
   0x4   :  { %s207_s16 = scalar_lea.vmem %s18_s13, 128  ;;  %p212_p1 = scmp.lt.s32.totalorder %s18_s13, %s18_s13 }
   0x5   :  { %p208_p0 = scmp.ne.s32.totalorder %s18_s13, %s207_s16  ;;  %p213_p2 = scmp.lt.s32.totalorder %s207_s16, %s207_s16 }
   0x7   :  { %p214_p3 = por %p213_p2, %p212_p1 }
   0x9   :  { %p215_p4 = pnand %p214_p3, %p208_p0 }
   0xb   :  { %218 = shalt.err (!%p215_p4)
}
   0xc   :  { %20 = dma.hbm_to_vmem [thread:$0]  %s307_s0, 128, %s18_s13, [#allocation4]  }
   0xd   :  { %s227_s19 = scalar_lea.vmem %s27_s15, 512  ;;  %p232_p6 = scmp.lt.s32.totalorder %s27_s15, %s27_s15 }
   0xe   :  { %p228_p5 = scmp.ne.s32.totalorder %s27_s15, %s227_s19  ;;  %p233_p7 = scmp.lt.s32.totalorder %s227_s19, %s227_s19 }
  0x10   :  { %p234_p8 = por %p233_p7, %p232_p6 }
  0x12   :  { %p235_p9 = pnand %p234_p8, %p228_p5 }
  0x14   :  { %238 = shalt.err (!%p235_p9)
}
  0x15   :  { %s267_s20 = smov 128   ;;  %s268_s21 = smov 8  }
  0x16   :  { %32 = dma.hbm_to_vmem [thread:$0]  %s308_s1, 512, %s27_s15, [#allocation7], %s267_s20, %s267_s20, %s268_s21  }
  0x17   :  { %259 = dma.done.wait [#allocation4], 128  }
  0x18   :  { %260 = vsyncadd [#allocation4], 4294967168 }
  0x19   :  { %261 = dma.done.wait [#allocation7], 512  }
  0x1a   :  { %262 = vsyncadd [#allocation7], 4294966784  ;;  %v269_v0 = vmov 0.0   ;;  %vm270_vm0 = vmmov 0   ;;  %v51_v1 = vld [vmem:[#allocation6 + $0x18] sm:$0xff]  ;;  %v50_v2 = vld [vmem:[#allocation6 + $0x10] sm:$0xff] }
  0x1b   :  { %178 = vmatprep.subr.mxu0 %v269_v0  ;;  %186 = vmatprep.mubr.msk.f32.mxu0 %vm270_vm0, %v269_v0  ;;  %v49_v3 = vld [vmem:[#allocation6 + $0x8] sm:$0xff]  ;;  %v48_v4 = vld [vmem:[#allocation6] sm:$0xff]  ;;  %v47_v5 = vld [vmem:[#allocation3] sm:$0xff]  ;;  %vm52_vm1 = vcmask 261120   ;;  %s271_s24 = smov 80   ;;  %s272_s25 = smov 112  }
  0x1c   :  { %179 = vmatpush3.msra.mxu0 %v51_v1  ;;  %v172_v6 = vld [vmem:[%s309_s2] ss:$0 sm:$0xff]  ;;  %s273_s26 = smov 96   ;;  %s274_s27 = smov [#allocation8]   ;;  %vm153_vm2 = vcmask 130048  }
  0x1d   :  { %180 = vmatprep.subr.mxu0 %v269_v0  ;;  %s161_s28 = sshll.u32 %s274_s27, 4  ;;  %s162_s28 = int_to_ptr.vmem [resolvable:$true] %s161_s28 }
  0x1e   :  { %181 = vmatpush3.msra.mxu0 %v50_v2  ;;  %s239_s2 = scalar_lea.vmem %s162_s28, 128  ;;  %p244_p11 = scmp.lt.s32.totalorder %s162_s28, %s162_s28 }
  0x1f   :  { %182 = vmatprep.subr.mxu0 %v269_v0  ;;  %p240_p10 = scmp.ne.s32.totalorder %s162_s28, %s239_s2  ;;  %p245_p12 = scmp.lt.s32.totalorder %s239_s2, %s239_s2 }
  0x20   :  { %183 = vmatpush3.msra.mxu0 %v49_v3 }
  0x21   :  { %184 = vmatprep.subr.mxu0 %v269_v0  ;;  %p246_p13 = por %p245_p12, %p244_p11 }
  0x22   :  { %185 = vmatpush3.msra.mxu0 %v48_v4 }
  0x23   :  { %187 = vmatmul.mubr.msk.f32.vlgmr.msra.gmra.mxu0 %vm52_vm1, %v47_v5  ;;  %p247_p0 = pnand %p246_p13, %p240_p10 }
  0xe3   :  { %v122_v7 = vpop.f32.mrf.mxu0 }
  0xe4   :  { %v139_v8 = vadd.f32 %v172_v6, %v122_v7 }
  0xe5   :  { %v188_v9 = vpop.f32.mrf.mxu0 }
  0xe6   :  { %149 = vrot.lane.b32.xlu1 %v139_v8, %s271_s24  ;;  %141 = vrot.lane.b32.xlu0 %v139_v8, %s272_s25 }
  0xea   :  { %145 = vrot.lane.b32.xlu0 %v139_v8, %s273_s26 }
 0x158   :  { %v142_v10 = vpop.permute.xlu0 %141  ;;  %v150_v14 = vpop.permute.xlu1 %149 }
 0x159   :  { %v144_v11 = vmax.f32 %v139_v8, %v142_v10 }
 0x15c   :  { %v146_v12 = vpop.permute.xlu0 %145 }
 0x15d   :  { %v148_v13 = vmax.f32 %v144_v11, %v146_v12 }
 0x15f   :  { %v152_v15 = vmax.f32 %v148_v13, %v150_v14 }
 0x161   :  { %154 = vst.msk [vmem:[#allocation8] sm:$0xff] %vm153_vm2, %v152_v15 }
 0x162   :  { %250 = shalt.err (!%p247_p0)
}
 0x163   :  { %164 = dma.vmem_to_hbm [thread:$0]  %s162_s28, 128, %s310_s3, [#allocation5]  }
 0x164   :  { %263 = dma.done.wait [#allocation5], 128  }
 0x165   :  { %264 = vsyncadd [#allocation5], 4294967168 }
 0x166   :  { %168 = vsyncpa [#allocation4], 1 }
 0x167   :  { %169 = vsyncpa [#allocation7], 1 }
 0x168   :  { %170 = vsyncpa [#allocation5], 1 }

</bundles_post_ra>
